<compile_context>
chip_gen: v6e
topology: v6e:2x2x1
jax: 0.10.0
libtpu: 0.0.40
codegen_flags: <defaults>
</compile_context>

<pallas_src>
import functools

import jax
import jax.numpy as jnp
import numpy as np
from jax import lax
from jax.experimental import pallas as pl
from jax.experimental.pallas import tpu as pltpu


def _round_up(v, m):
    return (v + m - 1) // m * m


def anfis_kernel(xr_ref, c_ref, w_ref, sel_ref, rph_ref, rpl_ref, o_ref):
    x_rep = xr_ref[...]                     # (TB, D*M) f32; group m holds x[0..D-1]
    c = c_ref[...]                          # (1, D*M) f32, c[0, m*D+i] = centers[i, m]
    wid = w_ref[...]                        # (1, D*M) f32, same layout as c
    NP = o_ref.shape[1]                     # lane-padded outputs per consequent term
    Dp1 = rph_ref.shape[1] // NP
    D = Dp1 - 1

    # Layer 1: log-domain Gaussian memberships, flattened with k = m*D + i.
    # NOTE: like the PyTorch module, zero widths would give non-finite values.
    diff = x_rep - c
    z = -(diff * diff) / (2.0 * wid * wid)                      # (TB, D*M)

    # Layer 2: rule firing strengths.  log(rule_r) = sum of the D selected
    # memberships = z @ sel (sel is 0/1, exact in bf16).  Split z into hi/lo
    # bf16 so two single-pass MXU matmuls reproduce f32 accuracy.
    z_hi = z.astype(jnp.bfloat16)
    z_lo = (z - z_hi.astype(jnp.float32)).astype(jnp.bfloat16)
    sel = sel_ref[...]                                          # (D*M, R) bf16
    log_rules = jnp.dot(z_hi, sel, preferred_element_type=jnp.float32)
    log_rules = log_rules + jnp.dot(z_lo, sel, preferred_element_type=jnp.float32)
    rules = jnp.exp(log_rules)                                  # (TB, R)

    # Layer 3: normalize firing strengths (guarded against total underflow).
    denom = jnp.sum(rules, axis=1, keepdims=True)               # (TB, 1)
    w_norm = rules / jnp.maximum(denom, 1e-30)                  # (TB, R)

    # Layers 4+5: first-order TSK consequents.  rp is (R, (D+1)*NP), already
    # lane-dense and split into bf16 hi/lo in the wrapper; 3 bf16 passes
    # (hi*hi + lo*hi + hi*lo) give ~f32 accuracy at half the HIGHEST cost.
    wn_hi = w_norm.astype(jnp.bfloat16)
    wn_lo = (w_norm - wn_hi.astype(jnp.float32)).astype(jnp.bfloat16)
    rp_hi = rph_ref[...]
    rp_lo = rpl_ref[...]
    g = jnp.dot(wn_hi, rp_hi, preferred_element_type=jnp.float32)
    g = g + jnp.dot(wn_lo, rp_hi, preferred_element_type=jnp.float32)
    g = g + jnp.dot(wn_hi, rp_lo, preferred_element_type=jnp.float32)   # (TB, (D+1)*NP)

    # out[b, n] = sum_m x_bias[b, m] * g[b, m*NP + n]; slices are 128-aligned.
    acc = g[:, D * NP:(D + 1) * NP]                             # bias term (coeff = 1)
    for m in range(D):
        acc = acc + x_rep[:, m:m + 1] * g[:, m * NP:(m + 1) * NP]
    o_ref[...] = acc                                            # lane-dense (TB, NP) store


def anfis_forward(x, centers, widths, rule_params, *, tile_b=128):
    """x:[B,D], centers/widths:[D,M], rule_params:[M**D, D+1, N] -> [B,N] f32."""
    B, D = x.shape
    Dc, M = centers.shape
    assert Dc == D and widths.shape == (D, M)
    R, Dp1, N = rule_params.shape
    assert Dp1 == D + 1
    assert R == M ** D, "rule_params must have num_mfs ** input_dim rules"

    DM = D * M
    NP = _round_up(N, 128)          # lane-dense consequent panels / output

    # ---- parameter-side layout plumbing (tiny, done once per call in XLA) ----
    # Flattened membership axis uses k = m*D + i (input index i fast), so each
    # M-wide group of the tiled x is just x itself.
    c_flat = centers.astype(jnp.float32).T.reshape(1, DM)
    w_flat = widths.astype(jnp.float32).T.reshape(1, DM)

    # One-hot rule decode sel[m*D+i, r] = 1 iff rule r uses MF m of input i.
    # Digits follow torch.cartesian_prod ordering (input 0 varies slowest).
    r_idx = np.arange(R)
    strides = (M ** (D - 1 - np.arange(D)))[:, None]            # (D, 1)
    digits = (r_idx[None, :] // strides) % M                    # (D, R)
    sel_np = np.zeros((DM, R), np.float32)
    for i in range(D):
        sel_np[digits[i] * D + i, r_idx] = 1.0
    sel = jnp.asarray(sel_np, dtype=jnp.bfloat16)               # exact 0/1 in bf16

    # Consequent params: (R, D+1, N) -> (R, (D+1)*NP), zero-padded on the
    # output axis, then hi/lo bf16 split for near-f32 MXU matmuls.
    rp = jnp.zeros((R, Dp1, NP), jnp.float32)
    rp = rp.at[:, :, :N].set(rule_params.astype(jnp.float32)).reshape(R, Dp1 * NP)
    rp_hi = rp.astype(jnp.bfloat16)
    rp_lo = (rp - rp_hi.astype(jnp.float32)).astype(jnp.bfloat16)

    # ---- batch tiling ----
    tb = min(tile_b, _round_up(B, 8))
    Bp = _round_up(B, tb)
    x_rep = jnp.tile(x.astype(jnp.float32), (1, M))             # (B, D*M)
    if Bp != B:
        x_rep = jnp.pad(x_rep, ((0, Bp - B), (0, 0)))           # zero rows stay finite
    grid = (Bp // tb,)

    out = pl.pallas_call(
        anfis_kernel,
        out_shape=jax.ShapeDtypeStruct((Bp, NP), jnp.float32),
        grid_spec=pltpu.PrefetchScalarGridSpec(
            num_scalar_prefetch=0,
            grid=grid,
            in_specs=[
                pl.BlockSpec((tb, DM), lambda i: (i, 0)),        # x tile (pipelined)
                pl.BlockSpec((1, DM), lambda i: (0, 0)),         # centers (resident)
                pl.BlockSpec((1, DM), lambda i: (0, 0)),         # widths (resident)
                pl.BlockSpec((DM, R), lambda i: (0, 0)),         # one-hot decode
                pl.BlockSpec((R, Dp1 * NP), lambda i: (0, 0)),   # rule params hi
                pl.BlockSpec((R, Dp1 * NP), lambda i: (0, 0)),   # rule params lo
            ],
            out_specs=pl.BlockSpec((tb, NP), lambda i: (i, 0)),
        ),
        compiler_params=pltpu.CompilerParams(
            dimension_semantics=("parallel",)),
    )(x_rep, c_flat, w_flat, sel, rp_hi, rp_lo)
    return out[:B, :N]


def anfis_reference(x, centers, widths, rule_params):
    """Pure-JAX f32 reference of the intended ANFIS forward."""
    B, D = x.shape
    mf = jnp.exp(-(x[:, :, None] - centers[None, :, :]) ** 2
                 / (2.0 * widths[None, :, :] ** 2))             # (B, D, M)
    rules = jnp.ones((B, 1), jnp.float32)
    for i in range(D):
        rules = (rules[:, :, None] * mf[:, i, None, :]).reshape(B, -1)
    w_norm = rules / jnp.sum(rules, axis=1, keepdims=True)      # (B, R)
    x_bias = jnp.concatenate([x, jnp.ones((B, 1), x.dtype)], axis=1)
    g = jnp.einsum('br,rmn->bmn', w_norm, rule_params,
                   precision=lax.Precision.HIGHEST)
    return jnp.einsum('bm,bmn->bn', x_bias, g,
                      precision=lax.Precision.HIGHEST)


if __name__ == "__main__":
    # Shapes consistent with ANFIS(input_dim=4, num_mfs=4, num_outputs=8).
    D, M, N = 4, 4, 8
    R = M ** D                                                   # 256 rules

    key = jax.random.PRNGKey(0)
    kx, kc, kr, kx2 = jax.random.split(key, 4)
    centers = jax.random.normal(kc, (D, M), jnp.float32)         # randn init
    widths = jnp.ones((D, M), jnp.float32)                       # ones init
    rule_params = jax.random.normal(kr, (R, D + 1, N), jnp.float32)

    fwd = jax.jit(functools.partial(anfis_forward))

    # Small batch (single grid step).
    B = 8
    x = jax.random.normal(kx, (B, D), jnp.float32)
    out = jax.block_until_ready(fwd(x, centers, widths, rule_params))
    assert out.shape == (B, N)
    ref = anfis_reference(x, centers, widths, rule_params)
    np.testing.assert_allclose(np.asarray(out), np.asarray(ref),
                               rtol=2e-3, atol=2e-3)

    # Larger, non-divisible batch to exercise the batch grid + padding path.
    B2 = 300
    x2 = jax.random.normal(kx2, (B2, D), jnp.float32)
    out2 = jax.block_until_ready(fwd(x2, centers, widths, rule_params))
    assert out2.shape == (B2, N)
    ref2 = anfis_reference(x2, centers, widths, rule_params)
    np.testing.assert_allclose(np.asarray(out2), np.asarray(ref2),
                               rtol=2e-3, atol=2e-3)

    print("KERNEL_OK")
</pallas_src>

<mosaic_0001>
module attributes {stable_mosaic.version = 11 : i64} {
  func.func @anfis_kernel(%arg0: i32, %arg1: memref<8x16xf32, #tpu.memory_space<vmem>>, %arg2: memref<1x16xf32, #tpu.memory_space<vmem>>, %arg3: memref<1x16xf32, #tpu.memory_space<vmem>>, %arg4: memref<16x256xbf16, #tpu.memory_space<vmem>>, %arg5: memref<256x640xbf16, #tpu.memory_space<vmem>>, %arg6: memref<256x640xbf16, #tpu.memory_space<vmem>>, %arg7: memref<8x128xf32, #tpu.memory_space<vmem>>) attributes {dimension_semantics = [#tpu.dimension_semantics<parallel>], iteration_bounds = array<i64: 1>, scalar_prefetch = 0 : i64, scratch_operands = 0 : i64, tpu.core_type = #tpu.core_type<tc>, window_params = [{transform_indices = @transform_0, window_bounds = array<i64: 8, 16>}, {pipeline_mode = #tpu.pipeline_mode<synchronous>, transform_indices = @transform_1, window_bounds = array<i64: 1, 16>}, {pipeline_mode = #tpu.pipeline_mode<synchronous>, transform_indices = @transform_2, window_bounds = array<i64: 1, 16>}, {pipeline_mode = #tpu.pipeline_mode<synchronous>, transform_indices = @transform_3, window_bounds = array<i64: 16, 256>}, {pipeline_mode = #tpu.pipeline_mode<synchronous>, transform_indices = @transform_4, window_bounds = array<i64: 256, 640>}, {pipeline_mode = #tpu.pipeline_mode<synchronous>, transform_indices = @transform_5, window_bounds = array<i64: 256, 640>}, {transform_indices = @transform_6, window_bounds = array<i64: 8, 128>}]} {
    %c0 = arith.constant 0 : index
    %c0_0 = arith.constant 0 : index
    %0 = vector.load %arg1[%c0, %c0_0] : memref<8x16xf32, #tpu.memory_space<vmem>>, vector<8x16xf32>
    %c0_1 = arith.constant 0 : index
    %c0_2 = arith.constant 0 : index
    %1 = vector.load %arg2[%c0_1, %c0_2] : memref<1x16xf32, #tpu.memory_space<vmem>>, vector<1x16xf32>
    %c0_3 = arith.constant 0 : index
    %c0_4 = arith.constant 0 : index
    %2 = vector.load %arg3[%c0_3, %c0_4] : memref<1x16xf32, #tpu.memory_space<vmem>>, vector<1x16xf32>
    %3 = vector.broadcast %1 : vector<1x16xf32> to vector<8x16xf32>
    %4 = arith.subf %0, %3 : vector<8x16xf32>
    %5 = arith.mulf %4, %4 : vector<8x16xf32>
    %cst = arith.constant 0.000000e+00 : f32
    %6 = vector.broadcast %cst : f32 to vector<8x16xf32>
    %7 = arith.subf %6, %5 : vector<8x16xf32>
    %cst_5 = arith.constant 2.000000e+00 : f32
    %8 = vector.broadcast %cst_5 : f32 to vector<1x16xf32>
    %9 = arith.mulf %8, %2 : vector<1x16xf32>
    %10 = arith.mulf %9, %2 : vector<1x16xf32>
    %11 = vector.broadcast %10 : vector<1x16xf32> to vector<8x16xf32>
    %12 = arith.divf %7, %11 : vector<8x16xf32>
    %13 = arith.truncf %12 : vector<8x16xf32> to vector<8x16xbf16>
    %14 = arith.extf %13 : vector<8x16xbf16> to vector<8x16xf32>
    %15 = arith.subf %12, %14 : vector<8x16xf32>
    %16 = arith.truncf %15 : vector<8x16xf32> to vector<8x16xbf16>
    %c0_6 = arith.constant 0 : index
    %c0_7 = arith.constant 0 : index
    %17 = vector.load %arg4[%c0_6, %c0_7] : memref<16x256xbf16, #tpu.memory_space<vmem>>, vector<16x256xbf16>
    %cst_8 = arith.constant dense<0.000000e+00> : vector<8x256xf32>
    %18 = tpu.matmul %13, %17, %cst_8 {dimension_numbers = #tpu.dot_dimension_numbers<[1], [0], [0], [1], [0, 0, 1, 1], [], []>} : vector<8x16xbf16>, vector<16x256xbf16>, vector<8x256xf32> -> vector<8x256xf32>
    %cst_9 = arith.constant dense<0.000000e+00> : vector<8x256xf32>
    %19 = tpu.matmul %16, %17, %cst_9 {dimension_numbers = #tpu.dot_dimension_numbers<[1], [0], [0], [1], [0, 0, 1, 1], [], []>} : vector<8x16xbf16>, vector<16x256xbf16>, vector<8x256xf32> -> vector<8x256xf32>
    %20 = arith.addf %18, %19 : vector<8x256xf32>
    %21 = math.exp %20 : vector<8x256xf32>
    %cst_10 = arith.constant dense<0.000000e+00> : vector<8xf32>
    %22 = vector.multi_reduction <add>, %21, %cst_10 [1] : vector<8x256xf32> to vector<8xf32>
    %23 = vector.shape_cast %22 : vector<8xf32> to vector<8x1xf32>
    %cst_11 = arith.constant 1.000000e-30 : f32
    %24 = vector.broadcast %cst_11 : f32 to vector<8x1xf32>
    %25 = arith.maximumf %23, %24 : vector<8x1xf32>
    %26 = vector.broadcast %25 : vector<8x1xf32> to vector<8x256xf32>
    %27 = arith.divf %21, %26 : vector<8x256xf32>
    %28 = arith.truncf %27 : vector<8x256xf32> to vector<8x256xbf16>
    %29 = arith.extf %28 : vector<8x256xbf16> to vector<8x256xf32>
    %30 = arith.subf %27, %29 : vector<8x256xf32>
    %31 = arith.truncf %30 : vector<8x256xf32> to vector<8x256xbf16>
    %c0_12 = arith.constant 0 : index
    %c0_13 = arith.constant 0 : index
    %32 = vector.load %arg5[%c0_12, %c0_13] : memref<256x640xbf16, #tpu.memory_space<vmem>>, vector<256x640xbf16>
    %c0_14 = arith.constant 0 : index
    %c0_15 = arith.constant 0 : index
    %33 = vector.load %arg6[%c0_14, %c0_15] : memref<256x640xbf16, #tpu.memory_space<vmem>>, vector<256x640xbf16>
    %cst_16 = arith.constant dense<0.000000e+00> : vector<8x640xf32>
    %34 = tpu.matmul %28, %32, %cst_16 {dimension_numbers = #tpu.dot_dimension_numbers<[1], [0], [0], [1], [0, 0, 1, 1], [], []>} : vector<8x256xbf16>, vector<256x640xbf16>, vector<8x640xf32> -> vector<8x640xf32>
    %cst_17 = arith.constant dense<0.000000e+00> : vector<8x640xf32>
    %35 = tpu.matmul %31, %32, %cst_17 {dimension_numbers = #tpu.dot_dimension_numbers<[1], [0], [0], [1], [0, 0, 1, 1], [], []>} : vector<8x256xbf16>, vector<256x640xbf16>, vector<8x640xf32> -> vector<8x640xf32>
    %36 = arith.addf %34, %35 : vector<8x640xf32>
    %cst_18 = arith.constant dense<0.000000e+00> : vector<8x640xf32>
    %37 = tpu.matmul %28, %33, %cst_18 {dimension_numbers = #tpu.dot_dimension_numbers<[1], [0], [0], [1], [0, 0, 1, 1], [], []>} : vector<8x256xbf16>, vector<256x640xbf16>, vector<8x640xf32> -> vector<8x640xf32>
    %38 = arith.addf %36, %37 : vector<8x640xf32>
    %39 = vector.extract_strided_slice %38 {offsets = [0, 512], sizes = [8, 128], strides = [1, 1]} : vector<8x640xf32> to vector<8x128xf32>
    %40 = vector.extract_strided_slice %0 {offsets = [0, 0], sizes = [8, 1], strides = [1, 1]} : vector<8x16xf32> to vector<8x1xf32>
    %41 = vector.extract_strided_slice %38 {offsets = [0, 0], sizes = [8, 128], strides = [1, 1]} : vector<8x640xf32> to vector<8x128xf32>
    %42 = vector.broadcast %40 : vector<8x1xf32> to vector<8x128xf32>
    %43 = arith.mulf %42, %41 : vector<8x128xf32>
    %44 = arith.addf %39, %43 : vector<8x128xf32>
    %45 = vector.extract_strided_slice %0 {offsets = [0, 1], sizes = [8, 1], strides = [1, 1]} : vector<8x16xf32> to vector<8x1xf32>
    %46 = vector.extract_strided_slice %38 {offsets = [0, 128], sizes = [8, 128], strides = [1, 1]} : vector<8x640xf32> to vector<8x128xf32>
    %47 = vector.broadcast %45 : vector<8x1xf32> to vector<8x128xf32>
    %48 = arith.mulf %47, %46 : vector<8x128xf32>
    %49 = arith.addf %44, %48 : vector<8x128xf32>
    %50 = vector.extract_strided_slice %0 {offsets = [0, 2], sizes = [8, 1], strides = [1, 1]} : vector<8x16xf32> to vector<8x1xf32>
    %51 = vector.extract_strided_slice %38 {offsets = [0, 256], sizes = [8, 128], strides = [1, 1]} : vector<8x640xf32> to vector<8x128xf32>
    %52 = vector.broadcast %50 : vector<8x1xf32> to vector<8x128xf32>
    %53 = arith.mulf %52, %51 : vector<8x128xf32>
    %54 = arith.addf %49, %53 : vector<8x128xf32>
    %55 = vector.extract_strided_slice %0 {offsets = [0, 3], sizes = [8, 1], strides = [1, 1]} : vector<8x16xf32> to vector<8x1xf32>
    %56 = vector.extract_strided_slice %38 {offsets = [0, 384], sizes = [8, 128], strides = [1, 1]} : vector<8x640xf32> to vector<8x128xf32>
    %57 = vector.broadcast %55 : vector<8x1xf32> to vector<8x128xf32>
    %58 = arith.mulf %57, %56 : vector<8x128xf32>
    %59 = arith.addf %54, %58 : vector<8x128xf32>
    %c0_19 = arith.constant 0 : index
    %c0_20 = arith.constant 0 : index
    %60 = vector.load %arg7[%c0_19, %c0_20] : memref<8x128xf32, #tpu.memory_space<vmem>>, vector<8x128xf32>
    tpu.vector_store %arg7[%c0_19, %c0_20], %59 {strides = array<i32>} : memref<8x128xf32, #tpu.memory_space<vmem>>, vector<8x128xf32>,
    return
  }
  func.func @transform_0(%arg0: i32) -> (i32, i32) {
    %c0_i32 = arith.constant 0 : i32
    %c0_i32_0 = arith.constant 0 : i32
    return %arg0, %c0_i32 : i32, i32
  }
  func.func @transform_1(%arg0: i32) -> (i32, i32) {
    %c0_i32 = arith.constant 0 : i32
    %c0_i32_0 = arith.constant 0 : i32
    %c0_i32_1 = arith.constant 0 : i32
    return %c0_i32, %c0_i32_0 : i32, i32
  }
  func.func @transform_2(%arg0: i32) -> (i32, i32) {
    %c0_i32 = arith.constant 0 : i32
    %c0_i32_0 = arith.constant 0 : i32
    %c0_i32_1 = arith.constant 0 : i32
    return %c0_i32, %c0_i32_0 : i32, i32
  }
  func.func @transform_3(%arg0: i32) -> (i32, i32) {
    %c0_i32 = arith.constant 0 : i32
    %c0_i32_0 = arith.constant 0 : i32
    %c0_i32_1 = arith.constant 0 : i32
    return %c0_i32, %c0_i32_0 : i32, i32
  }
  func.func @transform_4(%arg0: i32) -> (i32, i32) {
    %c0_i32 = arith.constant 0 : i32
    %c0_i32_0 = arith.constant 0 : i32
    %c0_i32_1 = arith.constant 0 : i32
    return %c0_i32, %c0_i32_0 : i32, i32
  }
  func.func @transform_5(%arg0: i32) -> (i32, i32) {
    %c0_i32 = arith.constant 0 : i32
    %c0_i32_0 = arith.constant 0 : i32
    %c0_i32_1 = arith.constant 0 : i32
    return %c0_i32, %c0_i32_0 : i32, i32
  }
  func.func @transform_6(%arg0: i32) -> (i32, i32) {
    %c0_i32 = arith.constant 0 : i32
    %c0_i32_0 = arith.constant 0 : i32
    return %arg0, %c0_i32 : i32, i32
  }
}

</mosaic_0001>

<bundles_post_ra>
// kernel: anfis_forward.1
= control target key start
LH: loop header
LB: loop body
LE: loop exit
PB: predicated region body
PF: predicated region fallthrough
CT: control target
= control target key end

     0   :  { %v40_v1 = vlaneseq  ;;  %v2105_v3 = vmov 0   ;;  %vm63_vm0 = vcmask 130048   ;;  %s2990_s0 = inlined_call_operand.vmem [shape: f32[8,16], index: 0, kind: input, shape index: {}]   ;;  %s2991_s1 = inlined_call_operand.vmem [shape: f32[1,16], index: 1, kind: input, shape index: {}]   ;;  %s2992_s2 = inlined_call_operand.vmem [shape: f32[1,16], index: 2, kind: input, shape index: {}]   ;;  %s2993_s3 = inlined_call_operand.vmem [shape: bf16[16,256], index: 3, kind: input, shape index: {}]   ;;  %s2994_s4 = inlined_call_operand.vmem [shape: bf16[256,640], index: 4, kind: input, shape index: {}]   ;;  %s2995_s5 = inlined_call_operand.vmem [shape: bf16[256,640], index: 5, kind: input, shape index: {}]   ;;  %s2996_s6 = inlined_call_operand.hbm [shape: f32[8,128], index: 6, kind: output, shape index: {}]  }
   0x1   :  { %v1847_v0 = vld [vmem:[%s2993_s3 + $0x4] ss:$8 sps:$4 sm:$0xff]   ;;  %v1849_v2 = vld [vmem:[%s2993_s3] ss:$8 sps:$4 sm:$0xff]   ;;  %99 = vmatprep.mubr.bf16.mxu1 %v2105_v3  ;;  %1842 = vset.pattern.permute.xlu0 %v2105_v3 }
   0x2   :  { %81 = vmatprep.subr.bf16.mxu1 %v1847_v0  ;;  %v27_v4 = vld [vmem:[%s2992_s2] sm:$0x1]  ;;  %v41_v5 = vshrl.u32 %v40_v1, 7 }
   0x3   :  { %82 = vmatpush1.bf16.msra.mxu1 %v1849_v2  ;;  %v37_v6 = vmul.f32 2.0, %v27_v4  ;;  %v2157_v9 = vld [vmem:[%s2990_s0] sm:$0xff] }
   0x4   :  { %125 = vmatprep.subr.bf16.mxu1 %v1847_v0  ;;  %v42_v7 = vsub.s32 0, %v41_v5  ;;  %3014 = vst [vmem:[#allocation5_spill] sm:$0xff] %v2157_v9  ;;  %v1606_v10 = vld [vmem:[%s2991_s1] ss:$0 sm:$0xff] }
   0x5   :  { %v38_v8 = vmul.f32 %v37_v6, %v27_v4  ;;  %v34_v12 = vsub.f32 %v2157_v9, %v1606_v10 }
   0x7   :  { %v43_v11 = vrot.slane %v38_v8, %v42_v7  ;;  %v35_v13 = vmul.f32 %v34_v12, %v34_v12 }
   0x9   :  { %2074 = vrcp.f32 %v43_v11  ;;  %v36_v14 = vsub.f32 0.0, %v35_v13 }
  0x16   :  { %v2075_v15 = vpop.eup %2074 }
  0x17   :  { %v46_v16 = vmul.f32 %v2075_v15, %v36_v14 }
  0x19   :  { %v47_v17 = vpack.c.bf16 %v46_v16, %v46_v16 }
  0x1b   :  { %v48_v18 = vunpack.c.l.bf16 %v47_v17 }
  0x1d   :  { %v49_v19 = vsub.f32 %v46_v16, %v48_v18 }
  0x1f   :  { %v50_v20 = vpack.c.bf16 %v49_v19, %v49_v19 }
  0x21   :  { %1609 = vmatmul.mubr.msk.bf16.vlgmr.msra.gmra.mxu1 %vm63_vm0, %v50_v20 }
  0x22   :  { %126 = vmatpush1.bf16.msra.mxu1 %v1849_v2  ;;  %143 = vmatprep.mubr.bf16.mxu1 %v2105_v3 }
  0x29   :  { %1610 = vmatmul.mubr.msk.bf16.vlgmr.msra.gmra.mxu1 %vm63_vm0, %v47_v17 }
  0x2a   :  { %11 = vsyncpa [#allocation3], 0  ;;  %v2166_v21 = vld [vmem:[%s2994_s4 + $0x11c] ss:$20 sps:$4 sm:$0xff]   ;;  %v2171_v22 = vld [vmem:[%s2994_s4 + $0x120] ss:$20 sps:$4 sm:$0xff]  }
  0x2b   :  { %v2176_v23 = vld [vmem:[%s2994_s4 + $0x124] ss:$20 sps:$4 sm:$0xff]   ;;  %v2186_v25 = vld [vmem:[%s2994_s4 + $0xf4] ss:$20 sps:$4 sm:$0xff]   ;;  %779 = vmatprep.subr.bf16.mxu0 %v2166_v21  ;;  %v2193_v26 = vld [vmem:[%s2994_s4 + $0xfc] ss:$20 sps:$4 sm:$0xff]  }
  0x2c   :  { %v2181_v24 = vld [vmem:[%s2994_s4 + $0x118] ss:$20 sps:$4 sm:$0xff]   ;;  %820 = vmatprep.subr.bf16.mxu1 %v2176_v23  ;;  %v2205_v28 = vld [vmem:[%s2994_s4 + $0xf0] ss:$20 sps:$4 sm:$0xff]   ;;  %v2217_v30 = vld [vmem:[%s2994_s4 + $0xd4] ss:$20 sps:$4 sm:$0xff]  }
  0x2d   :  { %780 = vmatpush1.bf16.msra.mxu0 %v2181_v24  ;;  %821 = vmatpush1.bf16.msra.mxu1 %v2171_v22  ;;  %v2200_v27 = vld [vmem:[%s2994_s4 + $0xf8] ss:$20 sps:$4 sm:$0xff]   ;;  %v2224_v31 = vld [vmem:[%s2994_s4 + $0xd0] ss:$20 sps:$4 sm:$0xff]   ;;  %v2229_v32 = vld [vmem:[%s2994_s4 + $0xc8] ss:$20 sps:$4 sm:$0xff]  }
  0x2e   :  { %781 = vmatprep.subr.bf16.mxu0 %v2186_v25  ;;  %822 = vmatprep.subr.bf16.mxu1 %v2193_v26  ;;  %v2212_v29 = vld [vmem:[%s2994_s4 + $0xcc] ss:$20 sps:$4 sm:$0xff]   ;;  %v2236_v33 = vld [vmem:[%s2994_s4 + $0xa4] ss:$20 sps:$4 sm:$0xff]   ;;  %v2248_v35 = vld [vmem:[%s2994_s4 + $0xa8] ss:$20 sps:$4 sm:$0xff]  }
  0x2f   :  { %v2241_v34 = vld [vmem:[%s2994_s4 + $0xac] ss:$20 sps:$4 sm:$0xff]   ;;  %v2260_v37 = vld [vmem:[%s2994_s4 + $0x7c] ss:$20 sps:$4 sm:$0xff]   ;;  %v2265_v38 = vld [vmem:[%s2994_s4 + $0x84] ss:$20 sps:$4 sm:$0xff]  }
  0x30   :  { %v2253_v36 = vld [vmem:[%s2994_s4 + $0xa0] ss:$20 sps:$4 sm:$0xff]   ;;  %v2277_v40 = vld [vmem:[%s2994_s4 + $0x78] ss:$20 sps:$4 sm:$0xff]   ;;  %v2289_v42 = vld [vmem:[%s2994_s4 + $0x5c] ss:$20 sps:$4 sm:$0xff]  }
  0x31   :  { %782 = vmatpush1.bf16.msra.mxu0 %v2205_v28  ;;  %823 = vmatpush1.bf16.msra.mxu1 %v2200_v27  ;;  %v2272_v39 = vld [vmem:[%s2994_s4 + $0x80] ss:$20 sps:$4 sm:$0xff]   ;;  %v2296_v43 = vld [vmem:[%s2994_s4 + $0x58] ss:$20 sps:$4 sm:$0xff]   ;;  %v2301_v44 = vld [vmem:[%s2994_s4 + $0x50] ss:$20 sps:$4 sm:$0xff]  }
  0x32   :  { %783 = vmatprep.subr.bf16.mxu0 %v2212_v29  ;;  %824 = vmatprep.subr.bf16.mxu1 %v2217_v30  ;;  %v2284_v41 = vld [vmem:[%s2994_s4 + $0x54] ss:$20 sps:$4 sm:$0xff]   ;;  %v2308_v45 = vld [vmem:[%s2994_s4 + $0x2c] ss:$20 sps:$4 sm:$0xff]   ;;  %v2320_v47 = vld [vmem:[%s2994_s4 + $0x30] ss:$20 sps:$4 sm:$0xff]  }
  0x33   :  { %v2313_v46 = vld [vmem:[%s2994_s4 + $0x34] ss:$20 sps:$4 sm:$0xff]   ;;  %v2332_v49 = vld [vmem:[%s2994_s4 + $0x4] ss:$20 sps:$4 sm:$0xff]   ;;  %v2337_v50 = vld [vmem:[%s2994_s4 + $0xc] ss:$20 sps:$4 sm:$0xff]  }
  0x34   :  { %v2325_v48 = vld [vmem:[%s2994_s4 + $0x28] ss:$20 sps:$4 sm:$0xff]   ;;  %v2349_v52 = vld [vmem:[%s2994_s4] ss:$20 sps:$4 sm:$0xff]   ;;  %v2361_v54 = vld [vmem:[%s2994_s4 + $0x264] ss:$20 sps:$4 sm:$0xff]  }
  0x35   :  { %784 = vmatpush1.bf16.msra.mxu0 %v2229_v32  ;;  %825 = vmatpush1.bf16.msra.mxu1 %v2224_v31  ;;  %v2344_v51 = vld [vmem:[%s2994_s4 + $0x8] ss:$20 sps:$4 sm:$0xff]   ;;  %v2368_v55 = vld [vmem:[%s2994_s4 + $0x260] ss:$20 sps:$4 sm:$0xff]   ;;  %v2373_v56 = vld [vmem:[%s2994_s4 + $0x258] ss:$20 sps:$4 sm:$0xff]  }
  0x36   :  { %785 = vmatprep.subr.bf16.mxu0 %v2236_v33  ;;  %826 = vmatprep.subr.bf16.mxu1 %v2241_v34  ;;  %v2356_v53 = vld [vmem:[%s2994_s4 + $0x25c] ss:$20 sps:$4 sm:$0xff]   ;;  %3015 = vst [vmem:[#allocation6_spill] sm:$0xff] %v2368_v55  ;;  %v2380_v57 = vld [vmem:[%s2994_s4 + $0x234] ss:$20 sps:$4 sm:$0xff]  }
  0x37   :  { %v2385_v58 = vld [vmem:[%s2994_s4 + $0x23c] ss:$20 sps:$4 sm:$0xff]   ;;  %v2392_v59 = vld [vmem:[%s2994_s4 + $0x238] ss:$20 sps:$4 sm:$0xff]   ;;  %v2411_v14 = vld [vmem:[%s2994_s4 + $0x214] ss:$20 sps:$4 sm:$0xff]  }
  0x38   :  { %3016 = vst [vmem:[#allocation7_spill] sm:$0xff] %v2385_v58  ;;  %3017 = vst [vmem:[#allocation8_spill] sm:$0xff] %v2392_v59  ;;  %v2397_v60 = vld [vmem:[%s2994_s4 + $0x230] ss:$20 sps:$4 sm:$0xff]   ;;  %v2406_v13 = vld [vmem:[%s2994_s4 + $0x20c] ss:$20 sps:$4 sm:$0xff]  }
  0x39   :  { %786 = vmatpush1.bf16.msra.mxu0 %v2253_v36  ;;  %827 = vmatpush1.bf16.msra.mxu1 %v2248_v35  ;;  %3018 = vst [vmem:[#allocation9_spill] sm:$0xff] %v2411_v14  ;;  %v2416_v15 = vld [vmem:[%s2994_s4 + $0x210] ss:$20 sps:$4 sm:$0xff]   ;;  %v2421_v16 = vld [vmem:[%s2994_s4 + $0x208] ss:$20 sps:$4 sm:$0xff]  }
  0x3a   :  { %787 = vmatprep.subr.bf16.mxu0 %v2260_v37  ;;  %828 = vmatprep.subr.bf16.mxu1 %v2265_v38  ;;  %3019 = vst [vmem:[#allocation10_spill] sm:$0xff] %v2416_v15  ;;  %v2428_v17 = vld [vmem:[%s2994_s4 + $0x1e4] ss:$20 sps:$4 sm:$0xff]   ;;  %v2433_v18 = vld [vmem:[%s2994_s4 + $0x1ec] ss:$20 sps:$4 sm:$0xff]  }
  0x3b   :  { %3020 = vst [vmem:[#allocation11_spill] sm:$0xff] %v2433_v18  ;;  %v2440_v19 = vld [vmem:[%s2994_s4 + $0x1e8] ss:$20 sps:$4 sm:$0xff]   ;;  %v2445_v20 = vld [vmem:[%s2994_s4 + $0x1e0] ss:$20 sps:$4 sm:$0xff]  }
  0x3c   :  { %3021 = vst [vmem:[#allocation12_spill] sm:$0xff] %v2440_v19 }
  0x3d   :  { %788 = vmatpush1.bf16.msra.mxu0 %v2277_v40  ;;  %829 = vmatpush1.bf16.msra.mxu1 %v2272_v39 }
  0x3e   :  { %789 = vmatprep.subr.bf16.mxu0 %v2284_v41  ;;  %830 = vmatprep.subr.bf16.mxu1 %v2289_v42 }
  0x41   :  { %790 = vmatpush1.bf16.msra.mxu0 %v2301_v44  ;;  %831 = vmatpush1.bf16.msra.mxu1 %v2296_v43 }
  0x42   :  { %791 = vmatprep.subr.bf16.mxu0 %v2308_v45  ;;  %832 = vmatprep.subr.bf16.mxu1 %v2313_v46 }
  0x45   :  { %792 = vmatpush1.bf16.msra.mxu0 %v2325_v48  ;;  %833 = vmatpush1.bf16.msra.mxu1 %v2320_v47 }
  0x46   :  { %793 = vmatprep.subr.bf16.mxu0 %v2332_v49  ;;  %834 = vmatprep.subr.bf16.mxu1 %v2337_v50 }
  0x49   :  { %794 = vmatpush1.bf16.msra.mxu0 %v2349_v52  ;;  %835 = vmatpush1.bf16.msra.mxu1 %v2344_v51 }
  0x4a   :  { %795 = vmatprep.subr.bf16.mxu0 %v2356_v53  ;;  %836 = vmatprep.subr.bf16.mxu1 %v2361_v54 }
  0x4d   :  { %796 = vmatpush2.bf16.msra.mxu0 %v2373_v56  ;;  %837 = vmatpush2.bf16.msra.mxu1 %v2368_v55 }
  0x4e   :  { %797 = vmatprep.subr.bf16.mxu0 %v2380_v57  ;;  %838 = vmatprep.subr.bf16.mxu1 %v2385_v58 }
  0x51   :  { %798 = vmatpush2.bf16.msra.mxu0 %v2397_v60  ;;  %839 = vmatpush2.bf16.msra.mxu1 %v2392_v59 }
  0x52   :  { %799 = vmatprep.subr.bf16.mxu0 %v2406_v13  ;;  %840 = vmatprep.subr.bf16.mxu1 %v2411_v14 }
  0x55   :  { %800 = vmatpush2.bf16.msra.mxu0 %v2421_v16  ;;  %841 = vmatpush2.bf16.msra.mxu1 %v2416_v15 }
  0x56   :  { %801 = vmatprep.subr.bf16.mxu0 %v2428_v17  ;;  %842 = vmatprep.subr.bf16.mxu1 %v2433_v18 }
  0x59   :  { %802 = vmatpush2.bf16.msra.mxu0 %v2445_v20  ;;  %843 = vmatpush2.bf16.msra.mxu1 %v2440_v19 }
  0xe1   :  { %v101_v61 = vpop.f32.mrf.mxu1 }
  0xe3   :  { %v103_v62 = vpop.f32.mrf.mxu1 }
  0xe5   :  { %v105_v63 = vpop.f32.mrf.mxu1 }
  0xe6   :  { %v2464_v63 = vld [vmem:[%s2994_s4 + $0x1c0] ss:$20 sps:$4 sm:$0xff]  }
  0xe7   :  { %v106_v0 = vpop.f32.mrf.mxu1  ;;  %3023 = vst [vmem:[#allocation14_spill] sm:$0xff] %v2464_v63 }
  0xe8   :  { %v2469_v0 = vld [vmem:[%s2994_s4 + $0x1b8] ss:$20 sps:$4 sm:$0xff]  }
  0xe9   :  { %v145_v1 = vpop.f32.mrf.mxu1 }
  0xea   :  { %v146_v2 = vadd.f32 %v145_v1, %v101_v61  ;;  %v2452_v61 = vld [vmem:[%s2994_s4 + $0x1bc] ss:$20 sps:$4 sm:$0xff]   ;;  %v2476_v1 = vld [vmem:[%s2994_s4 + $0x194] ss:$20 sps:$4 sm:$0xff]  }
  0xeb   :  { %v147_v3 = vpop.f32.mrf.mxu1  ;;  %803 = vmatprep.subr.bf16.mxu0 %v2452_v61 }
  0xec   :  { %v152_v4 = vmul.f32 1.442695, %v146_v2  ;;  %v148_v5 = vadd.f32 %v147_v3, %v103_v62  ;;  %v2457_v62 = vld [vmem:[%s2994_s4 + $0x1c4] ss:$20 sps:$4 sm:$0xff]   ;;  %v2481_v2 = vld [vmem:[%s2994_s4 + $0x19c] ss:$20 sps:$4 sm:$0xff]   ;;  %804 = vmatpush2.bf16.msra.mxu0 %v2469_v0 }
  0xed   :  { %v149_v6 = vpop.f32.mrf.mxu1  ;;  %3022 = vst [vmem:[#allocation13_spill] sm:$0xff] %v2457_v62  ;;  %844 = vmatprep.subr.bf16.mxu1 %v2457_v62  ;;  %3024 = vst [vmem:[#allocation15_spill] sm:$0xff] %v2481_v2  ;;  %v2488_v3 = vld [vmem:[%s2994_s4 + $0x198] ss:$20 sps:$4 sm:$0xff]   ;;  %805 = vmatprep.subr.bf16.mxu0 %v2476_v1 }
  0xee   :  { %v154_v7 = vmul.f32 1.442695, %v148_v5  ;;  %2076 = vpow2.f32 %v152_v4  ;;  %845 = vmatpush2.bf16.msra.mxu1 %v2464_v63  ;;  %3025 = vst [vmem:[#allocation16_spill] sm:$0xff] %v2488_v3  ;;  %v2493_v4 = vld [vmem:[%s2994_s4 + $0x190] ss:$20 sps:$4 sm:$0xff]  }
  0xef   :  { %v150_v8 = vpop.f32.mrf.mxu1  ;;  %846 = vmatprep.subr.bf16.mxu1 %v2481_v2  ;;  %v2500_v5 = vld [vmem:[%s2994_s4 + $0x16c] ss:$20 sps:$4 sm:$0xff]   ;;  %v2505_v6 = vld [vmem:[%s2994_s4 + $0x174] ss:$20 sps:$4 sm:$0xff]  }
  0xf0   :  { %2078 = vpow2.f32 %v154_v7  ;;  %3026 = vst [vmem:[#allocation17_spill] sm:$0xff] %v2505_v6  ;;  %806 = vmatpush2.bf16.msra.mxu0 %v2493_v4  ;;  %v2513_v7 = vld [vmem:[%s2994_s4 + $0x170] ss:$20 sps:$4 sm:$0xff]   ;;  %v2518_v8 = vld [vmem:[%s2994_s4 + $0x168] ss:$20 sps:$4 sm:$0xff]  }
  0xf1   :  { %3027 = vst [vmem:[#allocation18_spill] sm:$0xff] %v2513_v7  ;;  %807 = vmatprep.subr.bf16.mxu0 %v2500_v5  ;;  %v2537_v2 = vld [vmem:[%s2994_s4 + $0x148] ss:$20 sps:$4 sm:$0xff]  }
  0xf2   :  { %847 = vmatpush2.bf16.msra.mxu1 %v2488_v3  ;;  %v2530_v3 = vld [vmem:[%s2994_s4 + $0x14c] ss:$20 sps:$4 sm:$0xff]   ;;  %3029 = vst [vmem:[#allocation20_spill] sm:$0xff] %v2537_v2 }
  0xf3   :  { %848 = vmatprep.subr.bf16.mxu1 %v2505_v6  ;;  %3028 = vst [vmem:[#allocation19_spill] sm:$0xff] %v2530_v3  ;;  %v2542_v6 = vld [vmem:[%s2994_s4 + $0x140] ss:$20 sps:$4 sm:$0xff]  }
  0xf4   :  { %808 = vmatpush2.bf16.msra.mxu0 %v2518_v8 }
  0xf6   :  { %849 = vmatpush2.bf16.msra.mxu1 %v2513_v7  ;;  %v2551_v7 = vld [vmem:[%s2994_s4 + $0x268] ss:$20 sps:$4 sm:$0xff]  }
  0xf7   :  { %850 = vmatprep.subr.bf16.mxu1 %v2530_v3 }
  0xfa   :  { %851 = vmatpush2.bf16.msra.mxu1 %v2537_v2 }
  0xfb   :  { %v2077_v10 = vpop.eup %2076  ;;  %901 = vmatprep.subr.bf16.mxu1 %v2166_v21 }
  0xfd   :  { %v2079_v11 = vpop.eup %2078 }
  0xfe   :  { %v156_v12 = vadd.f32 %v2079_v11, %v2077_v10 }
 0x100   :  { %157 = vadd.xlane.f32.xlu0 %v156_v12  ;;  %v2525_v12 = vld [vmem:[%s2994_s4 + $0x144] ss:$20 sps:$4 sm:$0xff]  }
 0x101   :  { %809 = vmatprep.subr.bf16.mxu0 %v2525_v12 }
 0x102   :  { %810 = vmatpush2.bf16.msra.mxu0 %v2542_v6 }
 0x103   :  { %1771 = vmatprep.subr.bf16.mxu0 %v2551_v7 }
 0x116   :  { %1568 = vperm.xlu0 %1842, %v2157_v9  }
 0x189   :  { %v158_v63 = vpop.xlane.xlu0 %157 }
 0x18a   :  { %v159_v62 = vmax.f32 %v158_v63, 1e-30  ;;  %v2564_v63 = vld [vmem:[%s2994_s4 + $0x128] ss:$20 sps:$4 sm:$0xff]  }
 0x18c   :  { %2080 = vrcp.f32 %v159_v62  ;;  %v1991_v62 = vld [vmem:[%s2995_s5 + $0x84] ss:$20 sps:$4 sm:$0xff]  }
 0x199   :  { %v2081_v19 = vpop.eup %2080 }
 0x19a   :  { %v162_v18 = vmul.f32 %v2081_v19, %v2079_v11  ;;  %v161_v15 = vmul.f32 %v2081_v19, %v2077_v10  ;;  %v2569_v10 = vld [vmem:[%s2994_s4 + $0x240] ss:$20 sps:$4 sm:$0xff]  }
 0x19b   :  { %v1979_v11 = vld [vmem:[%s2995_s5 + $0xd4] ss:$20 sps:$4 sm:$0xff]  }
 0x19c   :  { %v2555_v3 = vpack.c.bf16 %v162_v18, %v162_v18  ;;  %v2557_v9 = vpack.c.bf16 %v161_v15, %v161_v15  ;;  %v1980_v19 = vld [vmem:[%s2995_s5 + $0xa0] ss:$20 sps:$4 sm:$0xff]  }
 0x19e   :  { %v166_v2 = vunpack.c.l.bf16 %v2555_v3  ;;  %v165_v14 = vunpack.c.l.bf16 %v2557_v9 }
 0x1a0   :  { %v168_v59 = vsub.f32 %v162_v18, %v166_v2  ;;  %v167_v58 = vsub.f32 %v161_v15, %v165_v14  ;;  %v1974_v14 = vld [vmem:[%s2995_s5 + $0xc8] ss:$20 sps:$4 sm:$0xff]   ;;  %v1977_v15 = vld [vmem:[%s2995_s5 + $0xd0] ss:$20 sps:$4 sm:$0xff]   ;;  %v2108_v18 = vmov 3  }
 0x1a1   :  { %1846 = vset.pattern.permute.xlu0 %v2108_v18  ;;  %v1989_v2 = vld [vmem:[%s2995_s5 + $0x80] ss:$20 sps:$4 sm:$0xff]  }
 0x1a2   :  { %v170_v55 = vpack.c.bf16 %v168_v59, %v168_v59  ;;  %v169_v21 = vpack.c.bf16 %v167_v58, %v167_v58  ;;  %v2576_v58 = vld [vmem:[%s2994_s4 + $0x100] ss:$20 sps:$4 sm:$0xff]   ;;  %v2582_v59 = vld [vmem:[%s2994_s4 + $0x218] ss:$20 sps:$4 sm:$0xff]  }
 0x1a4   :  { %811 = vmatprep.mubr.bf16.mxu0 %v170_v55  ;;  %852 = vmatprep.mubr.bf16.mxu1 %v170_v55 }
 0x1a5   :  { %812 = vmatmul.mubr.bf16.vlgmr.msra.gmra.mxu0 %v169_v21  ;;  %853 = vmatmul.mubr.bf16.vlgmr.msra.gmra.mxu1 %v169_v21 }
 0x1a6   :  { %1772 = vmatpush3.bf16.msra.mxu0 %v2564_v63  ;;  %902 = vmatpush1.bf16.msra.mxu1 %v2181_v24  ;;  %v2591_v24 = vld [vmem:[%s2994_s4 + $0xd8] ss:$20 sps:$4 sm:$0xff]  }
 0x1a7   :  { %893 = vmatprep.mubr.bf16.mxu0 %v170_v55  ;;  %933 = vmatprep.mubr.bf16.mxu1 %v2555_v3  ;;  %v2598_v55 = vld [vmem:[%s2994_s4 + $0x1f0] ss:$20 sps:$4 sm:$0xff]  }
 0x1a8   :  { %1773 = vmatprep.subr.bf16.mxu0 %v2569_v10  ;;  %903 = vmatprep.subr.bf16.mxu1 %v2186_v25  ;;  %v2605_v25 = vld [vmem:[%s2994_s4 + $0xb0] ss:$20 sps:$4 sm:$0xff]  }
 0x1aa   :  { %1774 = vmatpush3.bf16.msra.mxu0 %v2576_v58  ;;  %904 = vmatpush1.bf16.msra.mxu1 %v2205_v28  ;;  %v2612_v28 = vld [vmem:[%s2994_s4 + $0x1c8] ss:$20 sps:$4 sm:$0xff]  }
 0x1ab   :  { %1775 = vmatprep.subr.bf16.mxu0 %v2582_v59  ;;  %905 = vmatprep.subr.bf16.mxu1 %v2212_v29  ;;  %v2619_v29 = vld [vmem:[%s2994_s4 + $0x88] ss:$20 sps:$4 sm:$0xff]  }
 0x1ae   :  { %1776 = vmatpush3.bf16.msra.mxu0 %v2591_v24  ;;  %906 = vmatpush1.bf16.msra.mxu1 %v2229_v32  ;;  %v2626_v32 = vld [vmem:[%s2994_s4 + $0x1a0] ss:$20 sps:$4 sm:$0xff]  }
 0x1af   :  { %1777 = vmatprep.subr.bf16.mxu0 %v2598_v55  ;;  %907 = vmatprep.subr.bf16.mxu1 %v2236_v33  ;;  %v2633_v33 = vld [vmem:[%s2994_s4 + $0x60] ss:$20 sps:$4 sm:$0xff]  }
 0x1b2   :  { %1778 = vmatpush3.bf16.msra.mxu0 %v2605_v25  ;;  %908 = vmatpush1.bf16.msra.mxu1 %v2253_v36  ;;  %v2640_v36 = vld [vmem:[%s2994_s4 + $0x178] ss:$20 sps:$4 sm:$0xff]  }
 0x1b3   :  { %1779 = vmatprep.subr.bf16.mxu0 %v2612_v28  ;;  %909 = vmatprep.subr.bf16.mxu1 %v2260_v37  ;;  %v2647_v37 = vld [vmem:[%s2994_s4 + $0x38] ss:$20 sps:$4 sm:$0xff]  }
 0x1b6   :  { %1780 = vmatpush3.bf16.msra.mxu0 %v2619_v29  ;;  %910 = vmatpush1.bf16.msra.mxu1 %v2277_v40  ;;  %v2654_v40 = vld [vmem:[%s2994_s4 + $0x150] ss:$20 sps:$4 sm:$0xff]  }
 0x1b7   :  { %1781 = vmatprep.subr.bf16.mxu0 %v2626_v32  ;;  %911 = vmatprep.subr.bf16.mxu1 %v2284_v41  ;;  %v2661_v41 = vld [vmem:[%s2994_s4 + $0x10] ss:$20 sps:$4 sm:$0xff]  }
 0x1ba   :  { %1782 = vmatpush3.bf16.msra.mxu0 %v2633_v33  ;;  %912 = vmatpush1.bf16.msra.mxu1 %v2301_v44  ;;  %v3041_v44 = vld [vmem:[#allocation16_spill] sm:$0xff] }
 0x1bb   :  { %1783 = vmatprep.subr.bf16.mxu0 %v2640_v36  ;;  %913 = vmatprep.subr.bf16.mxu1 %v2308_v45  ;;  %v3042_v45 = vld [vmem:[#allocation17_spill] sm:$0xff] }
 0x1be   :  { %1784 = vmatpush3.bf16.msra.mxu0 %v2647_v37  ;;  %914 = vmatpush1.bf16.msra.mxu1 %v2325_v48  ;;  %v1964_v48 = vld [vmem:[%s2995_s5 + $0x11c] ss:$20 sps:$4 sm:$0xff]  }
 0x1bf   :  { %1785 = vmatprep.subr.bf16.mxu0 %v2654_v40  ;;  %915 = vmatprep.subr.bf16.mxu1 %v2332_v49  ;;  %v1967_v49 = vld [vmem:[%s2995_s5 + $0x124] ss:$20 sps:$4 sm:$0xff]  }
 0x1c2   :  { %1786 = vmatpush3.bf16.msra.mxu0 %v2661_v41  ;;  %916 = vmatpush1.bf16.msra.mxu1 %v2349_v52  ;;  %v1965_v52 = vld [vmem:[%s2995_s5 + $0x120] ss:$20 sps:$4 sm:$0xff]  }
 0x1c3   :  { %917 = vmatprep.subr.bf16.mxu1 %v2356_v53  ;;  %942 = vmatprep.subr.bf16.mxu0 %v2176_v23  ;;  %v3031_v23 = vld [vmem:[#allocation7_spill] sm:$0xff]  ;;  %v1970_v53 = vld [vmem:[%s2995_s5 + $0xf4] ss:$20 sps:$4 sm:$0xff]  }
 0x1c5   :  { %894 = vmatmul.mubr.bf16.vlgmr.msra.gmra.mxu0 %v169_v21  ;;  %v1998_v21 = vld [vmem:[%s2995_s5 + $0x28] ss:$20 sps:$4 sm:$0xff]  }
 0x1c6   :  { %918 = vmatpush2.bf16.msra.mxu1 %v2373_v56  ;;  %943 = vmatpush1.bf16.msra.mxu0 %v2171_v22  ;;  %v3030_v22 = vld [vmem:[#allocation6_spill] sm:$0xff] }
 0x1c7   :  { %974 = vmatprep.mubr.bf16.mxu0 %v2555_v3  ;;  %919 = vmatprep.subr.bf16.mxu1 %v2380_v57  ;;  %v1968_v56 = vld [vmem:[%s2995_s5 + $0xf0] ss:$20 sps:$4 sm:$0xff]   ;;  %v1971_v57 = vld [vmem:[%s2995_s5 + $0xf8] ss:$20 sps:$4 sm:$0xff]  }
 0x1c8   :  { %944 = vmatprep.subr.bf16.mxu0 %v2193_v26  ;;  %v3032_v26 = vld [vmem:[#allocation8_spill] sm:$0xff] }
 0x1ca   :  { %920 = vmatpush2.bf16.msra.mxu1 %v2397_v60  ;;  %945 = vmatpush1.bf16.msra.mxu0 %v2200_v27  ;;  %v3033_v27 = vld [vmem:[#allocation9_spill] sm:$0xff] }
 0x1cb   :  { %921 = vmatprep.subr.bf16.mxu1 %v2406_v13  ;;  %946 = vmatprep.subr.bf16.mxu0 %v2217_v30  ;;  %v2106_v30 = vmov 1   ;;  %v1976_v60 = vld [vmem:[%s2995_s5 + $0xcc] ss:$20 sps:$4 sm:$0xff]   ;;  %v2107_v13 = vmov 2  }
 0x1cc   :  { %1843 = vset.pattern.permute.xlu1 %v2106_v30  ;;  %v2028_v30 = vld [vmem:[%s2995_s5 + $0x1e0] ss:$20 sps:$4 sm:$0xff]  }
 0x1ce   :  { %922 = vmatpush2.bf16.msra.mxu1 %v2421_v16  ;;  %947 = vmatpush1.bf16.msra.mxu0 %v2224_v31  ;;  %v3034_v31 = vld [vmem:[#allocation5_spill] sm:$0xff]  ;;  %v1982_v16 = vld [vmem:[%s2995_s5 + $0xa4] ss:$20 sps:$4 sm:$0xff]  }
 0x1cf   :  { %923 = vmatprep.subr.bf16.mxu1 %v2428_v17  ;;  %948 = vmatprep.subr.bf16.mxu0 %v2241_v34  ;;  %v3035_v34 = vld [vmem:[#allocation10_spill] sm:$0xff]  ;;  %v1985_v17 = vld [vmem:[%s2995_s5 + $0xac] ss:$20 sps:$4 sm:$0xff]  }
 0x1d0   :  { %1574 = vperm.xlu1 %1843, %v3034_v31  }
 0x1d2   :  { %924 = vmatpush2.bf16.msra.mxu1 %v2445_v20  ;;  %949 = vmatpush1.bf16.msra.mxu0 %v2248_v35  ;;  %v3036_v35 = vld [vmem:[#allocation11_spill] sm:$0xff] }
 0x1d3   :  { %925 = vmatprep.subr.bf16.mxu1 %v2452_v61  ;;  %950 = vmatprep.subr.bf16.mxu0 %v2265_v38  ;;  %v3037_v38 = vld [vmem:[#allocation12_spill] sm:$0xff]  ;;  %v1983_v20 = vld [vmem:[%s2995_s5 + $0xa8] ss:$20 sps:$4 sm:$0xff]  }
 0x1d4   :  { %1844 = vset.pattern.permute.xlu1 %v2107_v13  ;;  %v1988_v61 = vld [vmem:[%s2995_s5 + $0x7c] ss:$20 sps:$4 sm:$0xff]   ;;  %v2063_v13 = vld [vmem:[%s2995_s5 + $0xd8] ss:$20 sps:$4 sm:$0xff]  }
 0x1d5   :  { %1580 = vperm.xlu1 %1844, %v3034_v31   ;;  %v2031_v31 = vld [vmem:[%s2995_s5 + $0x1e8] ss:$20 sps:$4 sm:$0xff]  }
 0x1d6   :  { %926 = vmatpush2.bf16.msra.mxu1 %v2469_v0  ;;  %951 = vmatpush1.bf16.msra.mxu0 %v2272_v39  ;;  %v3038_v39 = vld [vmem:[#allocation13_spill] sm:$0xff]  ;;  %v2082_v0 = vld [vmem:[%s2990_s0] sm:$0xff] }
 0x1d7   :  { %927 = vmatprep.subr.bf16.mxu1 %v2476_v1  ;;  %952 = vmatprep.subr.bf16.mxu0 %v2289_v42  ;;  %v3039_v42 = vld [vmem:[#allocation14_spill] sm:$0xff]  ;;  %v1986_v1 = vld [vmem:[%s2995_s5 + $0x78] ss:$20 sps:$4 sm:$0xff]  }
 0x1d9   :  { %1845 = vset.pattern.permute.xlu1 %v2108_v18  ;;  %v2069_v18 = vld [vmem:[%s2995_s5 + $0x60] ss:$20 sps:$4 sm:$0xff]  }
 0x1da   :  { %928 = vmatpush2.bf16.msra.mxu1 %v2493_v4  ;;  %953 = vmatpush1.bf16.msra.mxu0 %v2296_v43  ;;  %v3040_v43 = vld [vmem:[#allocation15_spill] sm:$0xff]  ;;  %v1994_v4 = vld [vmem:[%s2995_s5 + $0x54] ss:$20 sps:$4 sm:$0xff]  }
 0x1db   :  { %929 = vmatprep.subr.bf16.mxu1 %v2500_v5  ;;  %954 = vmatprep.subr.bf16.mxu0 %v2313_v46  ;;  %v3043_v46 = vld [vmem:[#allocation18_spill] sm:$0xff] }
 0x1dc   :  { %1586 = vperm.xlu1 %1845, %v2082_v0   ;;  %v1997_v5 = vld [vmem:[%s2995_s5 + $0x5c] ss:$20 sps:$4 sm:$0xff]  }
 0x1de   :  { %930 = vmatpush2.bf16.msra.mxu1 %v2518_v8  ;;  %955 = vmatpush1.bf16.msra.mxu0 %v2320_v47  ;;  %v3044_v47 = vld [vmem:[#allocation19_spill] sm:$0xff]  ;;  %v2000_v8 = vld [vmem:[%s2995_s5 + $0x2c] ss:$20 sps:$4 sm:$0xff]  }
 0x1df   :  { %931 = vmatprep.subr.bf16.mxu1 %v2525_v12  ;;  %956 = vmatprep.subr.bf16.mxu0 %v2337_v50  ;;  %v3045_v50 = vld [vmem:[#allocation20_spill] sm:$0xff]  ;;  %v2003_v12 = vld [vmem:[%s2995_s5 + $0x34] ss:$20 sps:$4 sm:$0xff]  }
 0x1e2   :  { %932 = vmatpush2.bf16.msra.mxu1 %v2542_v6  ;;  %957 = vmatpush1.bf16.msra.mxu0 %v2344_v51  ;;  %v1962_v51 = vld [vmem:[%s2995_s5 + $0x118] ss:$20 sps:$4 sm:$0xff]   ;;  %v1992_v6 = vld [vmem:[%s2995_s5 + $0x50] ss:$20 sps:$4 sm:$0xff]  }
 0x1e3   :  { %958 = vmatprep.subr.bf16.mxu0 %v2361_v54  ;;  %1793 = vmatprep.subr.bf16.mxu1 %v2551_v7  ;;  %v1973_v54 = vld [vmem:[%s2995_s5 + $0xfc] ss:$20 sps:$4 sm:$0xff]   ;;  %v1995_v7 = vld [vmem:[%s2995_s5 + $0x58] ss:$20 sps:$4 sm:$0xff]  }
 0x1e5   :  { %934 = vmatmul.mubr.bf16.vlgmr.msra.gmra.mxu1 %v2557_v9 }
 0x1e6   :  { %959 = vmatpush2.bf16.msra.mxu0 %v3030_v22  ;;  %1794 = vmatpush3.bf16.msra.mxu1 %v2564_v63  ;;  %v2001_v63 = vld [vmem:[%s2995_s5 + $0x30] ss:$20 sps:$4 sm:$0xff]   ;;  %v2022_v22 = vld [vmem:[%s2995_s5 + $0x208] ss:$20 sps:$4 sm:$0xff]  }
 0x1e7   :  { %1015 = vmatprep.mubr.bf16.mxu1 %v2555_v3  ;;  %960 = vmatprep.subr.bf16.mxu0 %v3031_v23  ;;  %v2025_v23 = vld [vmem:[%s2995_s5 + $0x210] ss:$20 sps:$4 sm:$0xff]  }
 0x1e8   :  { %1795 = vmatprep.subr.bf16.mxu1 %v2569_v10  ;;  %v2006_v10 = vld [vmem:[%s2995_s5 + $0x4] ss:$20 sps:$4 sm:$0xff]  }
 0x1ea   :  { %961 = vmatpush2.bf16.msra.mxu0 %v3032_v26  ;;  %1796 = vmatpush3.bf16.msra.mxu1 %v2576_v58  ;;  %v2009_v58 = vld [vmem:[%s2995_s5 + $0xc] ss:$20 sps:$4 sm:$0xff]   ;;  %v2030_v26 = vld [vmem:[%s2995_s5 + $0x1e4] ss:$20 sps:$4 sm:$0xff]  }
 0x1eb   :  { %962 = vmatprep.subr.bf16.mxu0 %v3033_v27  ;;  %1797 = vmatprep.subr.bf16.mxu1 %v2582_v59  ;;  %v2004_v59 = vld [vmem:[%s2995_s5] ss:$20 sps:$4 sm:$0xff]  }
 0x1ec   :  { %v2033_v27 = vld [vmem:[%s2995_s5 + $0x1ec] ss:$20 sps:$4 sm:$0xff]  }
 0x1ee   :  { %963 = vmatpush2.bf16.msra.mxu0 %v3035_v34  ;;  %1798 = vmatpush3.bf16.msra.mxu1 %v2591_v24  ;;  %v2007_v24 = vld [vmem:[%s2995_s5 + $0x8] ss:$20 sps:$4 sm:$0xff]  }
 0x1ef   :  { %964 = vmatprep.subr.bf16.mxu0 %v3036_v35  ;;  %1799 = vmatprep.subr.bf16.mxu1 %v2598_v55  ;;  %v2012_v55 = vld [vmem:[%s2995_s5 + $0x25c] ss:$20 sps:$4 sm:$0xff]   ;;  %v2039_v35 = vld [vmem:[%s2995_s5 + $0x1c4] ss:$20 sps:$4 sm:$0xff]  }
 0x1f0   :  { %v2036_v34 = vld [vmem:[%s2995_s5 + $0x1bc] ss:$20 sps:$4 sm:$0xff]  }
 0x1f2   :  { %965 = vmatpush2.bf16.msra.mxu0 %v3037_v38  ;;  %1800 = vmatpush3.bf16.msra.mxu1 %v2605_v25  ;;  %v2015_v25 = vld [vmem:[%s2995_s5 + $0x264] ss:$20 sps:$4 sm:$0xff]  }
 0x1f3   :  { %966 = vmatprep.subr.bf16.mxu0 %v3038_v39  ;;  %1801 = vmatprep.subr.bf16.mxu1 %v2612_v28  ;;  %v2010_v28 = vld [vmem:[%s2995_s5 + $0x258] ss:$20 sps:$4 sm:$0xff]   ;;  %v2037_v39 = vld [vmem:[%s2995_s5 + $0x1c0] ss:$20 sps:$4 sm:$0xff]  }
 0x1f4   :  { %v2034_v38 = vld [vmem:[%s2995_s5 + $0x1b8] ss:$20 sps:$4 sm:$0xff]  }
 0x1f6   :  { %967 = vmatpush2.bf16.msra.mxu0 %v3039_v42  ;;  %1802 = vmatpush3.bf16.msra.mxu1 %v2619_v29  ;;  %v2013_v29 = vld [vmem:[%s2995_s5 + $0x260] ss:$20 sps:$4 sm:$0xff]  }
 0x1f7   :  { %968 = vmatprep.subr.bf16.mxu0 %v3040_v43  ;;  %1803 = vmatprep.subr.bf16.mxu1 %v2626_v32  ;;  %v2018_v32 = vld [vmem:[%s2995_s5 + $0x234] ss:$20 sps:$4 sm:$0xff]   ;;  %v2045_v43 = vld [vmem:[%s2995_s5 + $0x19c] ss:$20 sps:$4 sm:$0xff]  }
 0x1f8   :  { %v2042_v42 = vld [vmem:[%s2995_s5 + $0x194] ss:$20 sps:$4 sm:$0xff]  }
 0x1fa   :  { %969 = vmatpush2.bf16.msra.mxu0 %v3041_v44  ;;  %1804 = vmatpush3.bf16.msra.mxu1 %v2633_v33  ;;  %v2021_v33 = vld [vmem:[%s2995_s5 + $0x23c] ss:$20 sps:$4 sm:$0xff]  }
 0x1fb   :  { %970 = vmatprep.subr.bf16.mxu0 %v3042_v45  ;;  %1805 = vmatprep.subr.bf16.mxu1 %v2640_v36  ;;  %v2016_v36 = vld [vmem:[%s2995_s5 + $0x230] ss:$20 sps:$4 sm:$0xff]   ;;  %v2043_v45 = vld [vmem:[%s2995_s5 + $0x198] ss:$20 sps:$4 sm:$0xff]  }
 0x1fc   :  { %v2040_v44 = vld [vmem:[%s2995_s5 + $0x190] ss:$20 sps:$4 sm:$0xff]  }
 0x1fe   :  { %971 = vmatpush2.bf16.msra.mxu0 %v3043_v46  ;;  %1806 = vmatpush3.bf16.msra.mxu1 %v2647_v37  ;;  %v2019_v37 = vld [vmem:[%s2995_s5 + $0x238] ss:$20 sps:$4 sm:$0xff]  }
 0x1ff   :  { %972 = vmatprep.subr.bf16.mxu0 %v3044_v47  ;;  %1807 = vmatprep.subr.bf16.mxu1 %v2654_v40  ;;  %v2024_v40 = vld [vmem:[%s2995_s5 + $0x20c] ss:$20 sps:$4 sm:$0xff]   ;;  %v2051_v47 = vld [vmem:[%s2995_s5 + $0x174] ss:$20 sps:$4 sm:$0xff]  }
 0x200   :  { %v2048_v46 = vld [vmem:[%s2995_s5 + $0x16c] ss:$20 sps:$4 sm:$0xff]  }
 0x202   :  { %973 = vmatpush2.bf16.msra.mxu0 %v3045_v50  ;;  %1808 = vmatpush3.bf16.msra.mxu1 %v2661_v41  ;;  %v2027_v41 = vld [vmem:[%s2995_s5 + $0x214] ss:$20 sps:$4 sm:$0xff]   ;;  %v2054_v50 = vld [vmem:[%s2995_s5 + $0x144] ss:$20 sps:$4 sm:$0xff]  }
 0x203   :  { %1439 = vmatprep.subr.bf16.mxu0 %v1964_v48  ;;  %1480 = vmatprep.subr.bf16.mxu1 %v1967_v49  ;;  %v2046_v48 = vld [vmem:[%s2995_s5 + $0x168] ss:$20 sps:$4 sm:$0xff]   ;;  %v2049_v49 = vld [vmem:[%s2995_s5 + $0x170] ss:$20 sps:$4 sm:$0xff]  }
 0x205   :  { %975 = vmatmul.mubr.bf16.vlgmr.msra.gmra.mxu0 %v2557_v9  ;;  %1016 = vmatmul.mubr.bf16.vlgmr.msra.gmra.mxu1 %v2557_v9 }
 0x206   :  { %1440 = vmatpush1.bf16.msra.mxu0 %v1962_v51  ;;  %1471 = vmatprep.mubr.bf16.mxu0 %v2555_v3  ;;  %v2057_v51 = vld [vmem:[%s2995_s5 + $0x14c] ss:$20 sps:$4 sm:$0xff]  }
 0x207   :  { %1481 = vmatpush1.bf16.msra.mxu1 %v1965_v52  ;;  %1512 = vmatprep.mubr.bf16.mxu1 %v2555_v3  ;;  %v2052_v52 = vld [vmem:[%s2995_s5 + $0x140] ss:$20 sps:$4 sm:$0xff]  }
 0x208   :  { %1441 = vmatprep.subr.bf16.mxu0 %v1970_v53  ;;  %1482 = vmatprep.subr.bf16.mxu1 %v1973_v54  ;;  %v2055_v53 = vld [vmem:[%s2995_s5 + $0x148] ss:$20 sps:$4 sm:$0xff]  }
 0x209   :  { %v2058_v54 = vld [vmem:[%s2995_s5 + $0x268] ss:$20 sps:$4 sm:$0xff]  }
 0x20a   :  { %1442 = vmatpush1.bf16.msra.mxu0 %v1968_v56  ;;  %v2059_v56 = vld [vmem:[%s2995_s5 + $0x128] ss:$20 sps:$4 sm:$0xff]  }
 0x20b   :  { %1483 = vmatpush1.bf16.msra.mxu1 %v1971_v57  ;;  %1443 = vmatprep.subr.bf16.mxu0 %v1976_v60  ;;  %v2060_v57 = vld [vmem:[%s2995_s5 + $0x240] ss:$20 sps:$4 sm:$0xff]  }
 0x20c   :  { %1484 = vmatprep.subr.bf16.mxu1 %v1979_v11  ;;  %v2061_v60 = vld [vmem:[%s2995_s5 + $0x100] ss:$20 sps:$4 sm:$0xff]   ;;  %v2062_v11 = vld [vmem:[%s2995_s5 + $0x218] ss:$20 sps:$4 sm:$0xff]  }
 0x20e   :  { %1444 = vmatpush1.bf16.msra.mxu0 %v1974_v14  ;;  %v2064_v14 = vld [vmem:[%s2995_s5 + $0x1f0] ss:$20 sps:$4 sm:$0xff]  }
 0x20f   :  { %1485 = vmatpush1.bf16.msra.mxu1 %v1977_v15  ;;  %1445 = vmatprep.subr.bf16.mxu0 %v1982_v16  ;;  %v2066_v15 = vld [vmem:[%s2995_s5 + $0x1c8] ss:$20 sps:$4 sm:$0xff]  }
 0x210   :  { %1486 = vmatprep.subr.bf16.mxu1 %v1985_v17  ;;  %v2067_v16 = vld [vmem:[%s2995_s5 + $0x88] ss:$20 sps:$4 sm:$0xff]   ;;  %v2068_v17 = vld [vmem:[%s2995_s5 + $0x1a0] ss:$20 sps:$4 sm:$0xff]  }
 0x212   :  { %1446 = vmatpush1.bf16.msra.mxu0 %v1980_v19  ;;  %v2070_v19 = vld [vmem:[%s2995_s5 + $0x178] ss:$20 sps:$4 sm:$0xff]  }
 0x213   :  { %1487 = vmatpush1.bf16.msra.mxu1 %v1983_v20  ;;  %1447 = vmatprep.subr.bf16.mxu0 %v1988_v61  ;;  %v2071_v20 = vld [vmem:[%s2995_s5 + $0x38] ss:$20 sps:$4 sm:$0xff]   ;;  %v2072_v61 = vld [vmem:[%s2995_s5 + $0x150] ss:$20 sps:$4 sm:$0xff]  }
 0x214   :  { %1488 = vmatprep.subr.bf16.mxu1 %v1991_v62  ;;  %v2073_v62 = vld [vmem:[%s2995_s5 + $0x10] ss:$20 sps:$4 sm:$0xff]  }
 0x216   :  { %1448 = vmatpush1.bf16.msra.mxu0 %v1986_v1 }
 0x217   :  { %1489 = vmatpush1.bf16.msra.mxu1 %v1989_v2  ;;  %1449 = vmatprep.subr.bf16.mxu0 %v1994_v4 }
 0x218   :  { %1490 = vmatprep.subr.bf16.mxu1 %v1997_v5 }
 0x21a   :  { %1450 = vmatpush1.bf16.msra.mxu0 %v1992_v6 }
 0x21b   :  { %1491 = vmatpush1.bf16.msra.mxu1 %v1995_v7  ;;  %1451 = vmatprep.subr.bf16.mxu0 %v2000_v8 }
 0x21c   :  { %1492 = vmatprep.subr.bf16.mxu1 %v2003_v12 }
 0x21e   :  { %1452 = vmatpush1.bf16.msra.mxu0 %v1998_v21 }
 0x21f   :  { %1493 = vmatpush1.bf16.msra.mxu1 %v2001_v63  ;;  %1453 = vmatprep.subr.bf16.mxu0 %v2006_v10 }
 0x220   :  { %1494 = vmatprep.subr.bf16.mxu1 %v2009_v58 }
 0x222   :  { %1454 = vmatpush1.bf16.msra.mxu0 %v2004_v59 }
 0x223   :  { %1495 = vmatpush1.bf16.msra.mxu1 %v2007_v24  ;;  %1455 = vmatprep.subr.bf16.mxu0 %v2012_v55 }
 0x224   :  { %1496 = vmatprep.subr.bf16.mxu1 %v2015_v25 }
 0x226   :  { %1456 = vmatpush2.bf16.msra.mxu0 %v2010_v28 }
 0x227   :  { %1497 = vmatpush2.bf16.msra.mxu1 %v2013_v29  ;;  %1457 = vmatprep.subr.bf16.mxu0 %v2018_v32 }
 0x228   :  { %1498 = vmatprep.subr.bf16.mxu1 %v2021_v33 }
 0x22a   :  { %1458 = vmatpush2.bf16.msra.mxu0 %v2016_v36 }
 0x22b   :  { %1499 = vmatpush2.bf16.msra.mxu1 %v2019_v37  ;;  %1459 = vmatprep.subr.bf16.mxu0 %v2024_v40 }
 0x22c   :  { %1500 = vmatprep.subr.bf16.mxu1 %v2027_v41 }
 0x22e   :  { %1460 = vmatpush2.bf16.msra.mxu0 %v2022_v22 }
 0x22f   :  { %1501 = vmatpush2.bf16.msra.mxu1 %v2025_v23  ;;  %1461 = vmatprep.subr.bf16.mxu0 %v2030_v26 }
 0x230   :  { %1502 = vmatprep.subr.bf16.mxu1 %v2033_v27 }
 0x232   :  { %1462 = vmatpush2.bf16.msra.mxu0 %v2028_v30 }
 0x233   :  { %1503 = vmatpush2.bf16.msra.mxu1 %v2031_v31  ;;  %1463 = vmatprep.subr.bf16.mxu0 %v2036_v34 }
 0x234   :  { %1504 = vmatprep.subr.bf16.mxu1 %v2039_v35 }
 0x236   :  { %1464 = vmatpush2.bf16.msra.mxu0 %v2034_v38 }
 0x237   :  { %1505 = vmatpush2.bf16.msra.mxu1 %v2037_v39  ;;  %1465 = vmatprep.subr.bf16.mxu0 %v2042_v42 }
 0x238   :  { %1506 = vmatprep.subr.bf16.mxu1 %v2045_v43 }
 0x23a   :  { %1466 = vmatpush2.bf16.msra.mxu0 %v2040_v44 }
 0x23b   :  { %1507 = vmatpush2.bf16.msra.mxu1 %v2043_v45  ;;  %1467 = vmatprep.subr.bf16.mxu0 %v2048_v46 }
 0x23c   :  { %1508 = vmatprep.subr.bf16.mxu1 %v2051_v47  ;;  %v1569_v47 = vpop.permute.xlu0 %1568 }
 0x23e   :  { %1468 = vmatpush2.bf16.msra.mxu0 %v2046_v48 }
 0x23f   :  { %1509 = vmatpush2.bf16.msra.mxu1 %v2049_v49  ;;  %1469 = vmatprep.subr.bf16.mxu0 %v2054_v50 }
 0x240   :  { %1510 = vmatprep.subr.bf16.mxu1 %v2057_v51 }
 0x242   :  { %1470 = vmatpush2.bf16.msra.mxu0 %v2052_v52 }
 0x243   :  { %1511 = vmatpush2.bf16.msra.mxu1 %v2055_v53  ;;  %1815 = vmatprep.subr.bf16.mxu0 %v2058_v54 }
 0x245   :  { %1472 = vmatmul.mubr.bf16.vlgmr.msra.gmra.mxu0 %v2557_v9 }
 0x246   :  { %1513 = vmatmul.mubr.bf16.vlgmr.msra.gmra.mxu1 %v2557_v9  ;;  %1816 = vmatpush3.bf16.msra.mxu0 %v2059_v56 }
 0x247   :  { %1553 = vmatprep.mubr.bf16.mxu0 %v2555_v3  ;;  %1817 = vmatprep.subr.bf16.mxu0 %v2060_v57  ;;  %v2065_v3 = vld [vmem:[%s2995_s5 + $0xb0] ss:$20 sps:$4 sm:$0xff]   ;;  %s2109_s5 = smov [#allocation2]  }
 0x248   :  { %s1598_s0 = sshll.u32 %s2109_s5, 4  ;;  %s1599_s0 = int_to_ptr.vmem [resolvable:$true] %s1598_s0 }
 0x249   :  { %s2083_s19 = scalar_lea.vmem %s1599_s0, 128  ;;  %p2088_p1 = scmp.lt.s32.totalorder %s1599_s0, %s1599_s0 }
 0x24a   :  { %1818 = vmatpush3.bf16.msra.mxu0 %v2061_v60  ;;  %p2084_p0 = scmp.ne.s32.totalorder %s1599_s0, %s2083_s19  ;;  %p2089_p2 = scmp.lt.s32.totalorder %s2083_s19, %s2083_s19 }
 0x24b   :  { %1819 = vmatprep.subr.bf16.mxu0 %v2062_v11  ;;  %v1575_v43 = vpop.permute.xlu1 %1574 }
 0x24c   :  { %p2090_p3 = por %p2089_p2, %p2088_p1 }
 0x24e   :  { %1820 = vmatpush3.bf16.msra.mxu0 %v2063_v13  ;;  %p2091_p4 = pnand %p2090_p3, %p2084_p0 }
 0x24f   :  { %1821 = vmatprep.subr.bf16.mxu0 %v2064_v14 }
 0x250   :  { %v1581_v45 = vpop.permute.xlu1 %1580 }
 0x252   :  { %1822 = vmatpush3.bf16.msra.mxu0 %v2065_v3 }
 0x253   :  { %1823 = vmatprep.subr.bf16.mxu0 %v2066_v15 }
 0x256   :  { %1824 = vmatpush3.bf16.msra.mxu0 %v2067_v16 }
 0x257   :  { %1825 = vmatprep.subr.bf16.mxu0 %v2068_v17  ;;  %v1587_v3 = vpop.permute.xlu1 %1586 }
 0x25a   :  { %1826 = vmatpush3.bf16.msra.mxu0 %v2069_v18 }
 0x25b   :  { %1827 = vmatprep.subr.bf16.mxu0 %v2070_v19 }
 0x25e   :  { %1828 = vmatpush3.bf16.msra.mxu0 %v2071_v20 }
 0x25f   :  { %1829 = vmatprep.subr.bf16.mxu0 %v2072_v61 }
 0x262   :  { %1830 = vmatpush3.bf16.msra.mxu0 %v2073_v62 }
 0x265   :  { %1554 = vmatmul.mubr.bf16.vlgmr.msra.gmra.mxu0 %v2557_v9  ;;  %v813_v0 = vpop.f32.mrf.mxu0  ;;  %v854_v1 = vpop.f32.mrf.mxu1 }
 0x267   :  { %v815_v2 = vpop.f32.mrf.mxu0  ;;  %v856_v4 = vpop.f32.mrf.mxu1 }
 0x269   :  { %v817_v5 = vpop.f32.mrf.mxu0  ;;  %v858_v6 = vpop.f32.mrf.mxu1 }
 0x26b   :  { %v818_v7 = vpop.f32.mrf.mxu0  ;;  %v859_v8 = vpop.f32.mrf.mxu1 }
 0x285   :  { %v1787_v12 = vpop.f32.mrf.mxu0 }
 0x287   :  { %v1788_v21 = vpop.f32.mrf.mxu0 }
 0x288   :  { %v1789_v63 = vadd.f32 %v1788_v21, %v1787_v12 }
 0x289   :  { %v1790_v10 = vpop.f32.mrf.mxu0 }
 0x28b   :  { %v1791_v58 = vpop.f32.mrf.mxu0 }
 0x2a5   :  { %v935_v59 = vpop.f32.mrf.mxu1 }
 0x2a6   :  { %v936_v24 = vadd.f32 %v935_v59, %v813_v0 }
 0x2a7   :  { %v937_v55 = vpop.f32.mrf.mxu1 }
 0x2a8   :  { %v938_v25 = vadd.f32 %v937_v55, %v815_v2 }
 0x2a9   :  { %v939_v28 = vpop.f32.mrf.mxu1 }
 0x2ab   :  { %v940_v29 = vpop.f32.mrf.mxu1 }
 0x2c5   :  { %v976_v9 = vpop.f32.mrf.mxu0  ;;  %v1809_v32 = vpop.f32.mrf.mxu1 }
 0x2c6   :  { %v977_v49 = vadd.f32 %v976_v9, %v854_v1 }
 0x2c7   :  { %v978_v33 = vpop.f32.mrf.mxu0  ;;  %v1810_v36 = vpop.f32.mrf.mxu1 }
 0x2c8   :  { %v1811_v37 = vadd.f32 %v1810_v36, %v1809_v32  ;;  %v979_v53 = vadd.f32 %v978_v33, %v856_v4 }
 0x2c9   :  { %v980_v40 = vpop.f32.mrf.mxu0  ;;  %v1812_v41 = vpop.f32.mrf.mxu1 }
 0x2ca   :  { %v1018_v22 = vadd.f32 %v1811_v37, %v1789_v63 }
 0x2cb   :  { %v981_v23 = vpop.f32.mrf.mxu0  ;;  %v1813_v26 = vpop.f32.mrf.mxu1 }
 0x305   :  { %v1473_v27 = vpop.f32.mrf.mxu0 }
 0x306   :  { %v1514_v30 = vpop.f32.mrf.mxu1  ;;  %v1561_v46 = vadd.f32 %v1473_v27, %v936_v24 }
 0x307   :  { %v1475_v31 = vpop.f32.mrf.mxu0  ;;  %v1563_v54 = vadd.f32 %v1514_v30, %v977_v49 }
 0x308   :  { %v1516_v34 = vpop.f32.mrf.mxu1  ;;  %v1562_v50 = vadd.f32 %v1475_v31, %v938_v25  ;;  %v1571_v56 = vmul.f32 %v1569_v47, %v1561_v46 }
 0x309   :  { %v1477_v35 = vpop.f32.mrf.mxu0  ;;  %v1564_v13 = vadd.f32 %v1516_v34, %v979_v53  ;;  %v1583_v15 = vmul.f32 %v1581_v45, %v1563_v54 }
 0x30a   :  { %v1518_v38 = vpop.f32.mrf.mxu1  ;;  %v1577_v11 = vmul.f32 %v1575_v43, %v1562_v50 }
 0x30b   :  { %v1478_v39 = vpop.f32.mrf.mxu0  ;;  %v1589_v17 = vmul.f32 %v1587_v3, %v1564_v13 }
 0x30c   :  { %v1519_v42 = vpop.f32.mrf.mxu1 }
 0x325   :  { %v1831_v44 = vpop.f32.mrf.mxu0 }
 0x327   :  { %v1832_v48 = vpop.f32.mrf.mxu0 }
 0x328   :  { %v1833_v51 = vadd.f32 %v1832_v48, %v1831_v44 }
 0x329   :  { %v1834_v52 = vpop.f32.mrf.mxu0 }
 0x32a   :  { %v1565_v57 = vadd.f32 %v1833_v51, %v1018_v22 }
 0x32b   :  { %v1835_v60 = vpop.f32.mrf.mxu0 }
 0x32c   :  { %v1572_v14 = vadd.f32 %v1571_v56, %v1565_v57 }
 0x32e   :  { %v1578_v16 = vadd.f32 %v1577_v11, %v1572_v14 }
 0x330   :  { %v1584_v18 = vadd.f32 %v1583_v15, %v1578_v16 }
 0x332   :  { %v1590_v19 = vadd.f32 %v1589_v17, %v1584_v18 }
 0x334   :  { %1591 = vst [vmem:[#allocation2] sm:$0xff] %v1590_v19 }
 0x335   :  { %2094 = shalt.err (!%p2091_p4)
}
 0x336   :  { %1601 = dma.vmem_to_hbm [thread:$0]  %s1599_s0, 128, %s2996_s6, [#allocation3]  }
 0x337   :  { %2103 = dma.done.wait [#allocation3], 128  }
 0x338   :  { %2104 = vsyncadd [#allocation3], 4294967168 }
 0x339   :  { %1605 = vsyncpa [#allocation3], 1 }

</bundles_post_ra>
